<compile_context>
chip_gen: v6e
topology: v6e:2x2x1
jax: 0.10.0
libtpu: 0.0.40
codegen_flags: <defaults>
</compile_context>

<pallas_src>
import jax
import jax.numpy as jnp
from jax import lax
from jax.experimental import pallas as pl
from jax.experimental.pallas import tpu as pltpu

# ---- small config consistent with the module --------------------------------
BATCH = 2
NUM_CHANNELS = 3
IMAGE_SIZE = 32
PATCH_SIZE = 4
HIDDEN = 128                                        # lane-dense hidden size
GRID_HW = IMAGE_SIZE // PATCH_SIZE                  # 8
NUM_PATCHES = GRID_HW * GRID_HW                     # 64 (multiple of 8 sublanes)
SEQ = NUM_PATCHES + 1                               # 65 (class token + patches)
PATCH_DIM = NUM_CHANNELS * PATCH_SIZE * PATCH_SIZE  # 48 (matmul K)


# ---- Pallas kernel -----------------------------------------------------------
def _embeddings_kernel(patches_ref, w_ref, cls_ref, out_ref):
    # patches_ref: (1, SEQ, PATCH_DIM) bf16  -- row 0 is a zero placeholder
    # w_ref:       (PATCH_DIM, HIDDEN) bf16  -- shared across grid (fetched once)
    # cls_ref:     (1, HIDDEN)         f32
    # out_ref:     (1, SEQ, HIDDEN)    f32
    pe = jnp.dot(patches_ref[0], w_ref[...],
                 preferred_element_type=jnp.float32)            # (SEQ, HIDDEN) f32
    row = lax.broadcasted_iota(jnp.int32, (SEQ, HIDDEN), 0)
    # Row 0 <- class embedding, rows 1.. <- patch embeddings (VPU select,
    # no concat / no sublane shift; store is a full aligned block).
    out_ref[0] = jnp.where(row == 0, cls_ref[...], pe)


# ---- hoisted constant prep (model-init time, NOT per forward call) -----------
def prepare_embedding_params(patch_weight, class_embedding):
    """patch_weight:    (HIDDEN, C, p, p) f32  (Conv2d weight layout)
       class_embedding: (HIDDEN,)         f32
       returns (w2d_bf16 (K, HIDDEN) bf16, cls_row (1, HIDDEN) f32)"""
    w2d = patch_weight.reshape(HIDDEN, PATCH_DIM).T.astype(jnp.bfloat16)
    cls = class_embedding.reshape(1, HIDDEN).astype(jnp.float32)
    return w2d, cls


# ---- per-call layout plumbing -------------------------------------------------
def patchify_with_cls_slot(pixel_values):
    """(B, C, H, W) f32 -> (B, SEQ, K) bf16 with a zero row 0 per batch element
    (placeholder the kernel overwrites with the class token).  Equivalent to the
    stride==kernel Conv2d's implicit im2col; layout plumbing only, no compute."""
    B = pixel_values.shape[0]
    p = PATCH_SIZE
    x = pixel_values.reshape(B, NUM_CHANNELS, GRID_HW, p, GRID_HW, p)
    x = x.transpose(0, 2, 4, 1, 3, 5)                      # (B, Hp, Wp, C, p, p)
    x = x.reshape(B, NUM_PATCHES, PATCH_DIM).astype(jnp.bfloat16)
    zero_row = jnp.zeros((B, 1, PATCH_DIM), jnp.bfloat16)
    return jnp.concatenate([zero_row, x], axis=1)          # (B, SEQ, K) bf16


# ---- forward ------------------------------------------------------------------
def mlcd_vision_embeddings(pixel_values, w2d_bf16, cls_row):
    """pixel_values: (B, C, H, W) f32; w2d_bf16/cls_row from prepare_embedding_params.
       returns (B, SEQ, HIDDEN) f32"""
    B = pixel_values.shape[0]
    patches = patchify_with_cls_slot(pixel_values)          # (B, SEQ, K) bf16

    bytes_accessed = (B * SEQ * PATCH_DIM * 2          # patches (bf16)
                      + PATCH_DIM * HIDDEN * 2         # weight  (bf16)
                      + HIDDEN * 4                     # cls     (f32)
                      + B * SEQ * HIDDEN * 4)          # output  (f32)
    cost = pl.CostEstimate(flops=2 * B * SEQ * PATCH_DIM * HIDDEN,
                           transcendentals=0,
                           bytes_accessed=bytes_accessed)

    return pl.pallas_call(
        _embeddings_kernel,
        grid=(B,),
        in_specs=[
            pl.BlockSpec((1, SEQ, PATCH_DIM), lambda b: (b, 0, 0)),
            pl.BlockSpec((PATCH_DIM, HIDDEN), lambda b: (0, 0)),
            pl.BlockSpec((1, HIDDEN), lambda b: (0, 0)),
        ],
        out_specs=pl.BlockSpec((1, SEQ, HIDDEN), lambda b: (b, 0, 0)),
        out_shape=jax.ShapeDtypeStruct((B, SEQ, HIDDEN), jnp.float32),
        compiler_params=pltpu.CompilerParams(
            dimension_semantics=("parallel",)),   # v7x: one batch element per TC
        cost_estimate=cost,
    )(patches, w2d_bf16, cls_row)


# ---- pure-JAX reference (correctness check) ----------------------------------
def reference_embeddings(pixel_values, patch_weight, class_embedding):
    B = pixel_values.shape[0]
    p = PATCH_SIZE
    x = pixel_values.reshape(B, NUM_CHANNELS, GRID_HW, p, GRID_HW, p)
    x = x.transpose(0, 2, 4, 1, 3, 5).reshape(B, NUM_PATCHES, PATCH_DIM)
    w2d = patch_weight.reshape(HIDDEN, PATCH_DIM).T
    pe = x @ w2d                                            # (B, P, D) f32
    cls = jnp.broadcast_to(class_embedding[None, None, :], (B, 1, HIDDEN))
    return jnp.concatenate([cls, pe], axis=1)               # (B, SEQ, D)


if __name__ == "__main__":
    k0, k1, k2 = jax.random.split(jax.random.PRNGKey(0), 3)
    pixel_values = jax.random.normal(
        k0, (BATCH, NUM_CHANNELS, IMAGE_SIZE, IMAGE_SIZE), dtype=jnp.float32)
    patch_weight = (0.02 * jax.random.normal(
        k1, (HIDDEN, NUM_CHANNELS, PATCH_SIZE, PATCH_SIZE))).astype(jnp.float32)
    class_embedding = jax.random.normal(k2, (HIDDEN,), dtype=jnp.float32)

    # Constant prep hoisted to init time (runs once, outside the forward path).
    w2d_bf16, cls_row = prepare_embedding_params(patch_weight, class_embedding)
    w2d_bf16, cls_row = jax.block_until_ready((w2d_bf16, cls_row))

    out = mlcd_vision_embeddings(pixel_values, w2d_bf16, cls_row)
    out = jax.block_until_ready(out)

    ref = reference_embeddings(pixel_values, patch_weight, class_embedding)
    assert out.shape == (BATCH, SEQ, HIDDEN)
    assert bool(jnp.all(jnp.isfinite(out)))
    # bf16 MXU operands (f32 accumulation) vs f32 reference -> loose tolerance.
    assert jnp.allclose(out, ref, atol=2e-2, rtol=2e-2)
    print("KERNEL_OK")
</pallas_src>

<mosaic_0001>
module attributes {stable_mosaic.version = 11 : i64} {
  func.func @_embeddings_kernel(%arg0: i32, %arg1: memref<1x65x48xbf16, #tpu.memory_space<vmem>>, %arg2: memref<48x128xbf16, #tpu.memory_space<vmem>>, %arg3: memref<1x128xf32, #tpu.memory_space<vmem>>, %arg4: memref<1x65x128xf32, #tpu.memory_space<vmem>>) attributes {dimension_semantics = [#tpu.dimension_semantics<parallel>], iteration_bounds = array<i64: 2>, scalar_prefetch = 0 : i64, scratch_operands = 0 : i64, tpu.core_type = #tpu.core_type<tc>, window_params = [{transform_indices = @transform_0, window_bounds = array<i64: 1, 65, 48>}, {pipeline_mode = #tpu.pipeline_mode<synchronous>, transform_indices = @transform_1, window_bounds = array<i64: 48, 128>}, {pipeline_mode = #tpu.pipeline_mode<synchronous>, transform_indices = @transform_2, window_bounds = array<i64: 1, 128>}, {transform_indices = @transform_3, window_bounds = array<i64: 1, 65, 128>}]} {
    %c0 = arith.constant 0 : index
    %c0_0 = arith.constant 0 : index
    %c0_1 = arith.constant 0 : index
    %0 = vector.load %arg1[%c0, %c0_0, %c0_1] : memref<1x65x48xbf16, #tpu.memory_space<vmem>>, vector<1x65x48xbf16>
    %1 = vector.shape_cast %0 : vector<1x65x48xbf16> to vector<65x48xbf16>
    %c0_2 = arith.constant 0 : index
    %c0_3 = arith.constant 0 : index
    %2 = vector.load %arg2[%c0_2, %c0_3] : memref<48x128xbf16, #tpu.memory_space<vmem>>, vector<48x128xbf16>
    %cst = arith.constant dense<0.000000e+00> : vector<65x128xf32>
    %3 = tpu.matmul %1, %2, %cst {dimension_numbers = #tpu.dot_dimension_numbers<[1], [0], [0], [1], [0, 0, 1, 1], [], []>} : vector<65x48xbf16>, vector<48x128xbf16>, vector<65x128xf32> -> vector<65x128xf32>
    %4 = tpu.iota {dimensions = array<i32: 0>} : vector<65x128xi32>
    %c0_i32 = arith.constant 0 : i32
    %5 = vector.broadcast %c0_i32 : i32 to vector<65x128xi32>
    %6 = arith.cmpi eq, %4, %5 : vector<65x128xi32>
    %c0_4 = arith.constant 0 : index
    %c0_5 = arith.constant 0 : index
    %7 = vector.load %arg3[%c0_4, %c0_5] : memref<1x128xf32, #tpu.memory_space<vmem>>, vector<1x128xf32>
    %8 = vector.shape_cast %7 : vector<1x128xf32> to vector<1x128xf32>
    %9 = vector.broadcast %8 : vector<1x128xf32> to vector<65x128xf32>
    %10 = arith.select %6, %9, %3 : vector<65x128xi1>, vector<65x128xf32>
    %c0_6 = arith.constant 0 : index
    %c0_7 = arith.constant 0 : index
    %c0_8 = arith.constant 0 : index
    %11 = vector.load %arg4[%c0_6, %c0_7, %c0_8] : memref<1x65x128xf32, #tpu.memory_space<vmem>>, vector<1x65x128xf32>
    %12 = vector.shape_cast %11 : vector<1x65x128xf32> to vector<65x128xf32>
    %13 = vector.shape_cast %10 : vector<65x128xf32> to vector<1x65x128xf32>
    tpu.vector_store %arg4[%c0_6, %c0_7, %c0_8], %13 {strides = array<i32>} : memref<1x65x128xf32, #tpu.memory_space<vmem>>, vector<1x65x128xf32>,
    return
  }
  func.func @transform_0(%arg0: i32) -> (i32, i32, i32) {
    %c0_i32 = arith.constant 0 : i32
    %c0_i32_0 = arith.constant 0 : i32
    %c0_i32_1 = arith.constant 0 : i32
    return %arg0, %c0_i32, %c0_i32_0 : i32, i32, i32
  }
  func.func @transform_1(%arg0: i32) -> (i32, i32) {
    %c0_i32 = arith.constant 0 : i32
    %c0_i32_0 = arith.constant 0 : i32
    %c0_i32_1 = arith.constant 0 : i32
    return %c0_i32, %c0_i32_0 : i32, i32
  }
  func.func @transform_2(%arg0: i32) -> (i32, i32) {
    %c0_i32 = arith.constant 0 : i32
    %c0_i32_0 = arith.constant 0 : i32
    %c0_i32_1 = arith.constant 0 : i32
    return %c0_i32, %c0_i32_0 : i32, i32
  }
  func.func @transform_3(%arg0: i32) -> (i32, i32, i32) {
    %c0_i32 = arith.constant 0 : i32
    %c0_i32_0 = arith.constant 0 : i32
    %c0_i32_1 = arith.constant 0 : i32
    return %arg0, %c0_i32, %c0_i32_0 : i32, i32, i32
  }
}

</mosaic_0001>

<bundles_post_ra>
// kernel: tpu_custom_call.1
= control target key start
LH: loop header
LB: loop body
LE: loop exit
PB: predicated region body
PF: predicated region fallthrough
CT: control target
= control target key end

     0   :  { %s528_s12 = smov 0   ;;  %s566_s0 = inlined_call_operand.vmem [shape: bf16[2,65,48], index: 0, kind: input, shape index: {}]   ;;  %s567_s1 = inlined_call_operand.vmem [shape: bf16[48,128], index: 1, kind: input, shape index: {}]   ;;  %s568_s2 = inlined_call_operand.vmem [shape: f32[1,128], index: 2, kind: input, shape index: {}]   ;;  %s569_s3 = inlined_call_operand.vmem [shape: f32[2,65,128], index: 3, kind: output, shape index: {}]  }
   0x1 LB: > { %s415_s13 = sadd.s32 4294967295, %s504_s12   ;;  %p419_p0 = scmp.ge.s32.totalorder %s504_s12, 1  ;;  %s504_s12 = sphi %s528_s12, %s13_s12  }
   0x2   : > { %p137_p1 = scmp.lt.s32.totalorder %s504_s12, 3 }
   0x4   : > { %p138_p2 = pnand %p419_p0, %p137_p1 }
   0x5   : > { %p161_p3 = scmp.lt.s32.totalorder (!%p138_p2), %s415_s13, 1 }
   0x6   : > { %141 = sbr.rel (%p138_p2) target bundleno = 239 (0xef), region = 32 }
   0xb   : > { %v490_v0 = vld [vmem:[%s567_s1 + $0x10] sm:$0xff]   ;;  %v506_v1 = vmov 0.0   ;;  %v491_v2 = vld [vmem:[%s567_s1 + $0x8] sm:$0xff]   ;;  %vm507_vm0 = vmmov 0   ;;  %s571_s13 = smov (!%p161_p3, %s415_s13), 1  ;;  %v492_v3 = vld [vmem:[%s567_s1] sm:$0xff]   ;;  %v316_v9 = vlaneseq }
   0xc   : > { %446 = vmatprep.subr.bf16.mxu0 %v506_v1  ;;  %472 = vmatprep.subr.bf16.mxu1 %v506_v1  ;;  %s478_s20 = smul.u32 36, %s571_s13  ;;  %vm228_vm1 = vcmask 392192   ;;  %v435_v11 = vld [vmem:[%s568_s2] ss:$0 sm:$0xff] }
   0xd   : > { %447 = vmatpush3.bf16.msra.mxu0 %v490_v0  ;;  %475 = vmatpush3.bf16.msra.mxu1 %v490_v0  ;;  %v317_v10 = vshrl.u32 %v316_v9, 7  ;;  %s479_s24 = smul.u32 72, %s571_s13 }
   0xe   : > { %448 = vmatprep.subr.bf16.mxu0 %v506_v1  ;;  %473 = vmatprep.subr.bf16.mxu1 %v506_v1  ;;  %s165_s23 = scalar_lea.vmem %s566_s0, %s478_s20 }
   0xf   : > { %452 = vmatprep.mubr.msk.bf16.mxu0 %vm507_vm0, %v506_v1  ;;  %464 = vmatprep.mubr.msk.bf16.mxu1 %vm507_vm0, %v506_v1  ;;  %v493_v4 = vld [vmem:[%s165_s23] sm:$0xff]   ;;  %v494_v5 = vld [vmem:[%s165_s23 + $0x18] sm:$0xff]   ;;  %v495_v6 = vld [vmem:[%s165_s23 + $0x8] sm:$0xff]   ;;  %vm326_vm2 = vcmp.eq.s32.totalorder %v317_v10, 0  ;;  %s170_s29 = scalar_lea.vmem %s569_s3, %s479_s24 }
  0x10   : > { %v496_v7 = vld [vmem:[%s165_s23 + $0x20] ss:$0 sps:$4 sm:$0x11]   ;;  %v497_v8 = vld [vmem:[%s165_s23 + $0x10] sm:$0xff]  }
  0x11   : > { %449 = vmatpush3.bf16.msra.mxu0 %v491_v2  ;;  %476 = vmatpush3.bf16.msra.mxu1 %v491_v2 }
  0x12   : > { %450 = vmatprep.subr.bf16.mxu0 %v506_v1  ;;  %474 = vmatprep.subr.bf16.mxu1 %v506_v1 }
  0x15   : > { %451 = vmatpush3.bf16.msra.mxu0 %v492_v3  ;;  %477 = vmatpush3.bf16.msra.mxu1 %v492_v3 }
  0x18   : > { %453 = vmatmul.mubr.msk.bf16.vlgmr.msra.gmra.mxu0 %vm228_vm1, %v493_v4  ;;  %465 = vmatmul.mubr.msk.bf16.vlgmr.msra.gmra.mxu1 %vm228_vm1, %v494_v5 }
  0x19   : > { %456 = vmatprep.mubr.msk.bf16.mxu0 %vm507_vm0, %v506_v1  ;;  %468 = vmatprep.mubr.msk.bf16.mxu1 %vm507_vm0, %v506_v1 }
  0x20   : > { %457 = vmatmul.mubr.msk.bf16.gmra.mxu0 %vm228_vm1, %v495_v6  ;;  %469 = vmatmul.mubr.msk.bf16.gmra.mxu1 %vm228_vm1, %v496_v7 }
  0x21   : > { %460 = vmatprep.mubr.msk.bf16.mxu0 %vm507_vm0, %v506_v1 }
  0x28   : > { %461 = vmatmul.mubr.msk.bf16.gmra.mxu0 %vm228_vm1, %v497_v8 }
  0xd8   : > { %v278_v12 = vpop.f32.mrf.mxu0  ;;  %v302_v13 = vpop.f32.mrf.mxu1 }
  0xd9   : > { %v342_v14 = vsel %vm326_vm2, %v435_v11, %v278_v12  ;;  %357 = vst [vmem:[%s170_s29 + $0x30] sm:$0xff] %v302_v13 }
  0xda   : > { %351 = vst [vmem:[%s170_s29] sm:$0xff] %v342_v14  ;;  %v454_v15 = vpop.f32.mrf.mxu0  ;;  %v466_v16 = vpop.f32.mrf.mxu1 }
  0xdc   : > { %v281_v17 = vpop.f32.mrf.mxu0  ;;  %v305_v18 = vpop.f32.mrf.mxu1 }
  0xdd   : > { %352 = vst [vmem:[%s170_s29 + $0x8] sm:$0xff] %v281_v17  ;;  %358 = vst [vmem:[%s170_s29 + $0x38] sm:$0xff] %v305_v18 }
  0xde   : > { %v455_v19 = vpop.f32.mrf.mxu0  ;;  %v467_v20 = vpop.f32.mrf.mxu1 }
  0xe0   : > { %v286_v21 = vpop.f32.mrf.mxu0  ;;  %v310_v22 = vpop.f32.mrf.mxu1 }
  0xe1   : > { %353 = vst [vmem:[%s170_s29 + $0x10] sm:$0xff] %v286_v21  ;;  %359 = vst [vmem:[%s170_s29 + $0x40] sm:$0x1] %v310_v22 }
  0xe2   : > { %v458_v23 = vpop.f32.mrf.mxu0  ;;  %v470_v24 = vpop.f32.mrf.mxu1 }
  0xe4   : > { %v289_v25 = vpop.f32.mrf.mxu0  ;;  %v313_v26 = vpop.f32.mrf.mxu1 }
  0xe5   : > { %354 = vst [vmem:[%s170_s29 + $0x18] sm:$0xff] %v289_v25 }
  0xe6   : > { %v459_v27 = vpop.f32.mrf.mxu0  ;;  %v471_v28 = vpop.f32.mrf.mxu1 }
  0xe8   : > { %v294_v29 = vpop.f32.mrf.mxu0 }
  0xe9   : > { %355 = vst [vmem:[%s170_s29 + $0x20] sm:$0xff] %v294_v29 }
  0xea   : > { %v462_v30 = vpop.f32.mrf.mxu0 }
  0xec   : > { %v297_v31 = vpop.f32.mrf.mxu0 }
  0xed   : > { %356 = vst [vmem:[%s170_s29 + $0x28] sm:$0xff] %v297_v31 }
  0xee   : > { %v463_v32 = vpop.f32.mrf.mxu0 }
  0xef PF: > { %s13_s12 = sadd.s32 1, %s504_s12  }
  0xf0   : > { %p10_p4 = scmp.ge.s32.totalorder %s13_s12, 4  }
  0xf2   :  { %12 = sbr.rel (!%p10_p4) target bundleno = 1 (0x1), region = 62 }

</bundles_post_ra>
